<compile_context>
chip_gen: v6e
topology: v6e:2x2x1
jax: 0.10.0
libtpu: 0.0.40
codegen_flags: <defaults>
</compile_context>

<pallas_src>
import jax
import jax.numpy as jnp
import numpy as np
from jax.experimental import pallas as pl
from jax.experimental.pallas import tpu as pltpu


# ----------------------------------------------------------------------------
# Pallas kernel: single GEMM + (bias-folded) position embedding
# ----------------------------------------------------------------------------
def _embed_kernel(x_ref, w_ref, pos_ref, o_ref):
    # x_ref  : (1, TN, Kcat_pad)  token tile for one batch element (frames
    #                             folded into K), compute dtype
    # w_ref  : (Kcat_pad, Hpad)   folded effective projection weight (constant)
    # pos_ref: (TN, Hpad)         position embedding with folded bias pre-added
    acc = jnp.dot(x_ref[0], w_ref[...], preferred_element_type=jnp.float32)
    o_ref[0] = (acc + pos_ref[...].astype(jnp.float32)).astype(o_ref.dtype)


# ----------------------------------------------------------------------------
# Offline weight fold (plain XLA; tiny weight-weight products, done once)
# ----------------------------------------------------------------------------
def _fold_weights(params, *, C, P, T, hidden, use_res_connect):
    HI = jax.lax.Precision.HIGHEST
    K = C * P * P
    w_real4 = params["w_real"].astype(jnp.float32)          # (H, C, P, P)
    w_imag4 = params["w_imag"].astype(jnp.float32)
    Wr = w_real4.reshape(hidden, K).T                        # (K, H)
    Wi = w_imag4.reshape(hidden, K).T                        # (K, H)
    br = params["b_real"].astype(jnp.float32)                # (H,)
    bi = params["b_imag"].astype(jnp.float32)                # (H,)
    wm = params["w_merge"][..., 0, 0].astype(jnp.float32)    # (H, 2H, T)
    a = params["a_1x1"].astype(jnp.float32)                  # (T, C, C)
    ab = params["a_1x1_bias"].astype(jnp.float32)            # (T, C)

    w_eff = []
    b_eff = params["b_merge"].astype(jnp.float32)
    for t in range(T):
        Mr = wm[:, :hidden, t].T                             # (H, H)
        Mi = wm[:, hidden:, t].T
        # kron(a_t.T, I_{P*P}) @ W, computed WITHOUT materializing the KxK kron
        WimWi = jnp.einsum("dc,hdpq->cpqh", a[t], w_imag4,
                           precision=HI).reshape(K, hidden)
        WimWr = jnp.einsum("dc,hdpq->cpqh", a[t], w_real4,
                           precision=HI).reshape(K, hidden)
        w_t = (jnp.dot(Wr - WimWi, Mr, precision=HI)
               + jnp.dot(WimWr + Wi, Mi, precision=HI))      # (K, H)
        # folded per-frame bias contribution
        aimWi = jnp.einsum("d,hdpq->h", ab[t], w_imag4, precision=HI)
        aimWr = jnp.einsum("d,hdpq->h", ab[t], w_real4, precision=HI)
        b_eff = (b_eff + jnp.dot(br - aimWi, Mr, precision=HI)
                 + jnp.dot(aimWr + bi, Mi, precision=HI))
        w_eff.append(w_t)
    if use_res_connect:
        # residual = frame-0 real projection -> fold into frame-0 weight/bias
        w_eff[0] = w_eff[0] + Wr
        b_eff = b_eff + br
    w_cat = jnp.concatenate(w_eff, axis=0)                   # (T*K, H)
    return w_cat, b_eff


def _round_up(x, m):
    return ((x + m - 1) // m) * m


def _pick_token_tile(n_tokens, *, max_tile, multiple):
    """Token-tile size: a multiple of `multiple` (sublane packing), <= max_tile,
    chosen to minimize the zero-token padding ceil(Np/TN)*TN - Np (larger
    tiles win ties).  The caller pads Np up to a multiple of the tile."""
    if n_tokens <= max_tile:
        return _round_up(n_tokens, multiple)
    best_t = multiple
    best_padded = _round_up(n_tokens, multiple)
    t = multiple
    while t <= max_tile:
        padded = _round_up(n_tokens, t)
        if padded <= best_padded:
            best_t, best_padded = t, padded
        t += multiple
    return best_t


# ----------------------------------------------------------------------------
# Wrapper
# ----------------------------------------------------------------------------
def multiframe_embeddings(x, params, *, patch_size, use_res_connect=True,
                          compute_dtype=jnp.bfloat16, out_dtype=None,
                          max_token_tile=512,
                          vmem_budget_bytes=40 * 1024 * 1024,
                          vmem_limit_bytes=48 * 1024 * 1024):
    """x: (B, C, T, H, W) float32. Returns (B, num_patches + 1, hidden)."""
    B, C, T, H, W = x.shape
    P = patch_size
    Hp, Wp = H // P, W // P
    Np = Hp * Wp
    hidden = params["w_real"].shape[0]
    K = C * P * P
    Kcat = T * K
    if out_dtype is None:
        out_dtype = compute_dtype

    # interpolate_pos_encoding is identity only on the torch fast path
    # (num_patches == num_positions and height == width); assert it instead
    # of silently mis-positioning.
    assert H == W, "non-square input needs bicubic pos-embed interpolation"
    assert params["pos_embed"].shape[1] - 1 == Np, \
        "num_patches != num_positions needs pos-embed interpolation"
    # TODO(synk): bicubic interpolate_pos_encoding for other image sizes has
    # no Pallas equivalent here; only the identity fast path is supported.

    # --- offline fold of all weight stages into one (T*K, H) matrix + bias
    w_cat, b_eff = _fold_weights(params, C=C, P=P, T=T, hidden=hidden,
                                 use_res_connect=use_res_connect)

    # --- pad hidden / contraction dim to lane multiples
    #     (hidden stays 128-granular: padding to 256 would inflate writeback;
    #      typical ViT hiddens 768/1024/1536 are already 256-aligned)
    Hpad = _round_up(hidden, 128)
    Kcat_pad = _round_up(Kcat, 256) if Kcat >= 256 else _round_up(Kcat, 128)
    pad_h = Hpad - hidden
    pad_k = Kcat_pad - Kcat
    # NOTE: for trained checkpoints, verify the bf16-cast folded weight against
    # the f32 fold (the ~1e-4-scale branches can fall under bf16 precision
    # once the residual Wr is folded in); keep w_cat f32 if it drifts.
    w_cat = jnp.pad(w_cat, ((0, pad_k), (0, pad_h))).astype(compute_dtype)

    # --- token tile: multiple of 16 for bf16 (vreg packs (16,128)), 8 for f32;
    #     capped by a VMEM budget so v7x (64 MiB) keeps 2-deep pipelining.
    multiple = 16 if jnp.dtype(compute_dtype).itemsize < 4 else 8
    x_item = jnp.dtype(compute_dtype).itemsize
    out_item = jnp.dtype(out_dtype).itemsize
    per_token = (2 * Kcat_pad * x_item        # x tile, double-buffered
                 + 2 * Hpad * out_item        # output tile, double-buffered
                 + 2 * Hpad * x_item)         # pos tile, double-buffered
    w_bytes = 2 * Kcat_pad * Hpad * x_item    # conservative (2 weight buffers)
    fit_tokens = max(multiple,
                     (max(vmem_budget_bytes - w_bytes, 0)) // max(per_token, 1))
    max_tile = min(max_token_tile,
                   max(multiple, (fit_tokens // multiple) * multiple))
    TN = _pick_token_tile(Np, max_tile=max_tile, multiple=multiple)
    if B == 1 and Np > multiple and _round_up(Np, TN) == TN:
        # keep >= 2 parallel grid blocks so both v7x TensorCores get work
        TN = max(multiple, _round_up(-(-Np // 2), multiple))
    Np_pad = _round_up(Np, TN)
    n_tiles = Np_pad // TN

    # --- position table with the folded bias PRE-ADDED, stored in compute
    #     dtype; padded rows/cols are zero (stripped after the call).
    pos_tok = params["pos_embed"][0, 1:, :].astype(jnp.float32) + b_eff[None, :]
    pos_tok = jnp.pad(pos_tok,
                      ((0, Np_pad - Np), (0, pad_h))).astype(compute_dtype)

    # --- patch extraction (B,C,T,H,W) -> (B, Np_pad, Kcat_pad)
    #     token = hp*Wp + wp (matches torch `.flatten(2).transpose(1,2)`),
    #     per-frame K order (c, ph, pw) matches Conv2d weight flattening.
    #     Cast to compute dtype BEFORE the shuffle (halves its HBM traffic).
    xt = x.astype(compute_dtype).reshape(B, C, T, Hp, P, Wp, P)
    xt = jnp.transpose(xt, (0, 3, 5, 2, 1, 4, 6))            # (B,Hp,Wp,T,C,P,P)
    x_patches = xt.reshape(B, Np, Kcat)
    x_patches = jnp.pad(x_patches, ((0, 0), (0, Np_pad - Np), (0, pad_k)))

    # token-tile axis OUTER, batch INNER -> pos block index constant over b,
    # so the pos table is not re-DMA'd per batch element.
    grid = (n_tiles, B)

    def run(weight_pipeline_mode):
        wkw = ({} if weight_pipeline_mode is None
               else {"pipeline_mode": weight_pipeline_mode})
        return pl.pallas_call(
            _embed_kernel,
            out_shape=jax.ShapeDtypeStruct((B, Np_pad, Hpad), out_dtype),
            grid_spec=pltpu.PrefetchScalarGridSpec(
                num_scalar_prefetch=0,
                grid=grid,
                in_specs=[
                    pl.BlockSpec((1, TN, Kcat_pad), lambda n, b: (b, n, 0)),
                    pl.BlockSpec((Kcat_pad, Hpad), lambda n, b: (0, 0), **wkw),
                    pl.BlockSpec((TN, Hpad), lambda n, b: (n, 0)),
                ],
                out_specs=pl.BlockSpec((1, TN, Hpad), lambda n, b: (b, n, 0)),
            ),
            compiler_params=pltpu.CompilerParams(
                dimension_semantics=("parallel", "parallel"),
                vmem_limit_bytes=vmem_limit_bytes),
        )(x_patches, w_cat, pos_tok)

    try:
        # single-buffer the constant weight block (its index_map is (0,0)
        # across the whole grid) to halve its resident VMEM footprint
        patch_out = jax.block_until_ready(run(pl.Buffered(1)))
    except Exception:
        # fallback if this JAX/Mosaic build rejects buffer_count=1
        patch_out = run(None)

    # --- glue: strip hidden / token padding, prepend CLS token (+ its pos slot)
    patch_tokens = patch_out[:, :Np, :hidden]                # (B, Np, hidden)
    cls = (params["cls_token"] + params["pos_embed"][:, :1, :]).astype(out_dtype)
    cls = jnp.broadcast_to(cls, (B, 1, hidden))
    out = jnp.concatenate([cls, patch_tokens], axis=1)
    # dropout is identity at inference (eval mode)
    return out


# ----------------------------------------------------------------------------
# Pure-JAX reference (mirrors the torch module semantics)
# ----------------------------------------------------------------------------
def _conv_patch(x, w, P):
    return jax.lax.conv_general_dilated(
        x, w, window_strides=(P, P), padding="VALID",
        dimension_numbers=("NCHW", "OIHW", "NCHW"),
        precision=jax.lax.Precision.HIGHEST)


def reference(x, params, *, patch_size, use_res_connect=True):
    B, C, T, H, W = x.shape
    P = patch_size
    hidden = params["w_real"].shape[0]
    Wr, Wi = params["w_real"], params["w_imag"]
    br, bi = params["b_real"], params["b_imag"]
    res, ims = [], []
    for t in range(T):
        xt = x[:, :, t]
        imag = (jnp.einsum("dc,bchw->bdhw", params["a_1x1"][t], xt,
                           precision=jax.lax.Precision.HIGHEST)
                + params["a_1x1_bias"][t][None, :, None, None])
        re = (_conv_patch(xt, Wr, P) - _conv_patch(imag, Wi, P)
              + br[None, :, None, None])
        im = (_conv_patch(imag, Wr, P) + _conv_patch(xt, Wi, P)
              + bi[None, :, None, None])
        res.append(re)
        ims.append(im)
    re_s = jnp.stack(res, axis=2)                     # (B,H,T,Hp,Wp)
    im_s = jnp.stack(ims, axis=2)
    cat = jnp.concatenate([re_s, im_s], axis=1)       # (B,2H,T,Hp,Wp)
    wm = params["w_merge"][..., 0, 0]                 # (H,2H,T)
    merged = (jnp.einsum("odt,bdthw->bohw", wm, cat,
                         precision=jax.lax.Precision.HIGHEST)
              + params["b_merge"][None, :, None, None])
    if use_res_connect:
        merged = merged + _conv_patch(x[:, :, 0], Wr, P) + br[None, :, None, None]
    emb = merged.reshape(B, hidden, -1).transpose(0, 2, 1)   # (B,Np,H)
    cls = jnp.broadcast_to(params["cls_token"], (B, 1, hidden))
    emb = jnp.concatenate([cls, emb], axis=1)
    return emb + params["pos_embed"]


# ----------------------------------------------------------------------------
# Main
# ----------------------------------------------------------------------------
if __name__ == "__main__":
    # small config: image 16x16, patch 8 -> 4 patches, hidden 32, 2 frames
    B, C, T, H, W = 2, 4, 2, 16, 16
    P = 8
    Hp, Wp = H // P, W // P
    Np = Hp * Wp
    hidden = 32
    other_frame_init_weight = 1e-4
    time_indexs = list(range(T))          # [0, 1]

    key = jax.random.PRNGKey(0)
    ks = jax.random.split(key, 12)

    params = {
        # old_projection (real part of ComplexConv2d) + its bias
        "w_real": 0.02 * jax.random.normal(ks[0], (hidden, C, P, P), jnp.float32),
        "b_real": 0.02 * jax.random.normal(ks[1], (hidden,), jnp.float32),
        # imaginary projection weights (normal std = other_frame_init_weight)
        "w_imag": other_frame_init_weight
        * jax.random.normal(ks[2], (hidden, C, P, P), jnp.float32),
        # TODO(synk): ComplexConv2d source not provided; assume standard complex
        # conv with zero-initialized imaginary bias.
        "b_imag": jnp.zeros((hidden,), jnp.float32),
        # per-frame 1x1 convs, weight ~ N(mean=time_index, std=init_weight)
        "a_1x1": (jnp.arange(T, dtype=jnp.float32)[:, None, None]
                  + other_frame_init_weight
                  * jax.random.normal(ks[3], (T, C, C), jnp.float32)),
        "a_1x1_bias": 0.02 * jax.random.normal(ks[4], (T, C), jnp.float32),
        # time_merge_layer Conv3d(2H -> H, kernel (T,1,1))
        "w_merge": other_frame_init_weight
        * jax.random.normal(ks[5], (hidden, 2 * hidden, T, 1, 1), jnp.float32),
        "b_merge": 0.02 * jax.random.normal(ks[6], (hidden,), jnp.float32),
        # Dinov2Embeddings parameters
        "cls_token": jax.random.normal(ks[7], (1, 1, hidden), jnp.float32),
        "pos_embed": jax.random.normal(ks[8], (1, Np + 1, hidden), jnp.float32),
    }

    x = jax.random.normal(ks[9], (B, C, T, H, W), jnp.float32)

    ref = jax.block_until_ready(
        reference(x, params, patch_size=P, use_res_connect=True))

    # 1) f32-operand run: verifies the offline weight fold is numerically exact
    out_f32 = jax.block_until_ready(
        multiframe_embeddings(x, params, patch_size=P, use_res_connect=True,
                              compute_dtype=jnp.float32))
    assert out_f32.shape == (B, Np + 1, hidden), out_f32.shape
    np.testing.assert_allclose(np.asarray(out_f32), np.asarray(ref),
                               rtol=2e-3, atol=2e-3)

    # 2) bf16-operand / bf16-output run (MXU fast path, f32 accumulation)
    out_bf16 = jax.block_until_ready(
        multiframe_embeddings(x, params, patch_size=P, use_res_connect=True,
                              compute_dtype=jnp.bfloat16))
    assert out_bf16.shape == (B, Np + 1, hidden), out_bf16.shape
    np.testing.assert_allclose(np.asarray(out_bf16.astype(jnp.float32)),
                               np.asarray(ref), rtol=2e-2, atol=2e-2)

    print("KERNEL_OK")
</pallas_src>

<mosaic_0001>
module attributes {stable_mosaic.version = 11 : i64} {
  func.func @_embed_kernel(%arg0: i32, %arg1: i32, %arg2: memref<1x8x512xf32, #tpu.memory_space<vmem>>, %arg3: memref<512x128xf32, #tpu.memory_space<vmem>>, %arg4: memref<8x128xf32, #tpu.memory_space<vmem>>, %arg5: memref<1x8x128xf32, #tpu.memory_space<vmem>>) attributes {dimension_semantics = [#tpu.dimension_semantics<parallel>, #tpu.dimension_semantics<parallel>], iteration_bounds = array<i64: 1, 2>, scalar_prefetch = 0 : i64, scratch_operands = 0 : i64, tpu.core_type = #tpu.core_type<tc>, window_params = [{transform_indices = @transform_0, window_bounds = array<i64: 1, 8, 512>}, {pipeline_mode = #tpu.pipeline_mode<synchronous>, transform_indices = @transform_1, window_bounds = array<i64: 512, 128>}, {transform_indices = @transform_2, window_bounds = array<i64: 8, 128>}, {transform_indices = @transform_3, window_bounds = array<i64: 1, 8, 128>}]} {
    %c0 = arith.constant 0 : index
    %c0_0 = arith.constant 0 : index
    %c0_1 = arith.constant 0 : index
    %0 = vector.load %arg2[%c0, %c0_0, %c0_1] : memref<1x8x512xf32, #tpu.memory_space<vmem>>, vector<1x8x512xf32>
    %1 = vector.shape_cast %0 : vector<1x8x512xf32> to vector<8x512xf32>
    %c0_2 = arith.constant 0 : index
    %c0_3 = arith.constant 0 : index
    %2 = vector.load %arg3[%c0_2, %c0_3] : memref<512x128xf32, #tpu.memory_space<vmem>>, vector<512x128xf32>
    %cst = arith.constant dense<0.000000e+00> : vector<8x128xf32>
    %3 = tpu.matmul %1, %2, %cst {dimension_numbers = #tpu.dot_dimension_numbers<[1], [0], [0], [1], [0, 0, 1, 1], [], []>} : vector<8x512xf32>, vector<512x128xf32>, vector<8x128xf32> -> vector<8x128xf32>
    %c0_4 = arith.constant 0 : index
    %c0_5 = arith.constant 0 : index
    %4 = vector.load %arg4[%c0_4, %c0_5] : memref<8x128xf32, #tpu.memory_space<vmem>>, vector<8x128xf32>
    %5 = arith.addf %3, %4 : vector<8x128xf32>
    %c0_6 = arith.constant 0 : index
    %c0_7 = arith.constant 0 : index
    %c0_8 = arith.constant 0 : index
    %6 = vector.load %arg5[%c0_6, %c0_7, %c0_8] : memref<1x8x128xf32, #tpu.memory_space<vmem>>, vector<1x8x128xf32>
    %7 = vector.shape_cast %6 : vector<1x8x128xf32> to vector<8x128xf32>
    %8 = vector.shape_cast %5 : vector<8x128xf32> to vector<1x8x128xf32>
    tpu.vector_store %arg5[%c0_6, %c0_7, %c0_8], %8 {strides = array<i32>} : memref<1x8x128xf32, #tpu.memory_space<vmem>>, vector<1x8x128xf32>,
    return
  }
  func.func @transform_0(%arg0: i32, %arg1: i32) -> (i32, i32, i32) {
    %c0_i32 = arith.constant 0 : i32
    %c0_i32_0 = arith.constant 0 : i32
    return %arg1, %arg0, %c0_i32 : i32, i32, i32
  }
  func.func @transform_1(%arg0: i32, %arg1: i32) -> (i32, i32) {
    %c0_i32 = arith.constant 0 : i32
    %c0_i32_0 = arith.constant 0 : i32
    %c0_i32_1 = arith.constant 0 : i32
    return %c0_i32, %c0_i32_0 : i32, i32
  }
  func.func @transform_2(%arg0: i32, %arg1: i32) -> (i32, i32) {
    %c0_i32 = arith.constant 0 : i32
    %c0_i32_0 = arith.constant 0 : i32
    return %arg0, %c0_i32 : i32, i32
  }
  func.func @transform_3(%arg0: i32, %arg1: i32) -> (i32, i32, i32) {
    %c0_i32 = arith.constant 0 : i32
    %c0_i32_0 = arith.constant 0 : i32
    return %arg1, %arg0, %c0_i32 : i32, i32, i32
  }
}

module attributes {stable_mosaic.version = 11 : i64} {
  func.func @_embed_kernel(%arg0: i32, %arg1: i32, %arg2: memref<1x8x512xf32, #tpu.memory_space<vmem>>, %arg3: memref<512x128xf32, #tpu.memory_space<vmem>>, %arg4: memref<8x128xf32, #tpu.memory_space<vmem>>, %arg5: memref<1x8x128xf32, #tpu.memory_space<vmem>>) attributes {dimension_semantics = [#tpu.dimension_semantics<parallel>, #tpu.dimension_semantics<parallel>], iteration_bounds = array<i64: 1, 2>, scalar_prefetch = 0 : i64, scratch_operands = 0 : i64, tpu.core_type = #tpu.core_type<tc>, window_params = [{transform_indices = @transform_0, window_bounds = array<i64: 1, 8, 512>}, {pipeline_mode = #tpu.pipeline_mode<synchronous>, transform_indices = @transform_1, window_bounds = array<i64: 512, 128>}, {transform_indices = @transform_2, window_bounds = array<i64: 8, 128>}, {transform_indices = @transform_3, window_bounds = array<i64: 1, 8, 128>}]} {
    %c0 = arith.constant 0 : index
    %c0_0 = arith.constant 0 : index
    %c0_1 = arith.constant 0 : index
    %0 = vector.load %arg2[%c0, %c0_0, %c0_1] : memref<1x8x512xf32, #tpu.memory_space<vmem>>, vector<1x8x512xf32>
    %1 = vector.shape_cast %0 : vector<1x8x512xf32> to vector<8x512xf32>
    %c0_2 = arith.constant 0 : index
    %c0_3 = arith.constant 0 : index
    %2 = vector.load %arg3[%c0_2, %c0_3] : memref<512x128xf32, #tpu.memory_space<vmem>>, vector<512x128xf32>
    %cst = arith.constant dense<0.000000e+00> : vector<8x128xf32>
    %3 = tpu.matmul %1, %2, %cst {dimension_numbers = #tpu.dot_dimension_numbers<[1], [0], [0], [1], [0, 0, 1, 1], [], []>} : vector<8x512xf32>, vector<512x128xf32>, vector<8x128xf32> -> vector<8x128xf32>
    %c0_4 = arith.constant 0 : index
    %c0_5 = arith.constant 0 : index
    %4 = vector.load %arg4[%c0_4, %c0_5] : memref<8x128xf32, #tpu.memory_space<vmem>>, vector<8x128xf32>
    %5 = arith.addf %3, %4 : vector<8x128xf32>
    %c0_6 = arith.constant 0 : index
    %c0_7 = arith.constant 0 : index
    %c0_8 = arith.constant 0 : index
    %6 = vector.load %arg5[%c0_6, %c0_7, %c0_8] : memref<1x8x128xf32, #tpu.memory_space<vmem>>, vector<1x8x128xf32>
    %7 = vector.shape_cast %6 : vector<1x8x128xf32> to vector<8x128xf32>
    %8 = vector.shape_cast %5 : vector<8x128xf32> to vector<1x8x128xf32>
    tpu.vector_store %arg5[%c0_6, %c0_7, %c0_8], %8 {strides = array<i32>} : memref<1x8x128xf32, #tpu.memory_space<vmem>>, vector<1x8x128xf32>,
    return
  }
  func.func @transform_0(%arg0: i32, %arg1: i32) -> (i32, i32, i32) {
    %c0_i32 = arith.constant 0 : i32
    %c0_i32_0 = arith.constant 0 : i32
    return %arg1, %arg0, %c0_i32 : i32, i32, i32
  }
  func.func @transform_1(%arg0: i32, %arg1: i32) -> (i32, i32) {
    %c0_i32 = arith.constant 0 : i32
    %c0_i32_0 = arith.constant 0 : i32
    %c0_i32_1 = arith.constant 0 : i32
    return %c0_i32, %c0_i32_0 : i32, i32
  }
  func.func @transform_2(%arg0: i32, %arg1: i32) -> (i32, i32) {
    %c0_i32 = arith.constant 0 : i32
    %c0_i32_0 = arith.constant 0 : i32
    return %arg0, %c0_i32 : i32, i32
  }
  func.func @transform_3(%arg0: i32, %arg1: i32) -> (i32, i32, i32) {
    %c0_i32 = arith.constant 0 : i32
    %c0_i32_0 = arith.constant 0 : i32
    return %arg1, %arg0, %c0_i32 : i32, i32, i32
  }
}

</mosaic_0001>

<bundles_post_ra>
// kernel: tpu_custom_call.1
= control target key start
LH: loop header
LB: loop body
LE: loop exit
PB: predicated region body
PF: predicated region fallthrough
CT: control target
= control target key end

     0   :  { %8 = vsyncpa [#allocation3], 0  ;;  %s1114_s0 = inlined_call_operand.hbm [shape: f32[2,8,512], index: 0, kind: input, shape index: {}]   ;;  %s1115_s1 = inlined_call_operand.hbm [shape: f32[512,128], index: 1, kind: input, shape index: {}]   ;;  %s1116_s2 = inlined_call_operand.hbm [shape: f32[8,128], index: 2, kind: input, shape index: {}]   ;;  %s1117_s3 = inlined_call_operand.hbm [shape: f32[2,8,128], index: 3, kind: output, shape index: {}]  }
   0x1   :  { %10 = vsyncpa [#allocation3 + $0x1], 0 }
   0x2   :  { %11 = vsyncpa [#allocation6], 0 }
   0x3   :  { %12 = vsyncpa [#allocation4], 0 }
   0x4   :  { %14 = vsyncpa [#allocation4 + $0x1], 0  ;;  %s933_s12 = smov 0   ;;  %s935_s13 = smov 0  }
   0x5   :  { %s937_s14 = smov 0   ;;  %s939_s15 = smov 0  }
   0x6   :  { %s941_s16 = smov 0   ;;  %s943_s17 = smov 0  }
   0x7 LB: > { %s567_s18 = sadd.s32 4294967295, %s905_s17   ;;  %s568_s19 = sadd.s32 4294967294, %s905_s17   ;;  %s905_s17 = sphi %s943_s17, %s20_s17   ;;  %s901_s16 = sphi %s941_s16, %s1137_s16   ;;  %s897_s15 = sphi %s939_s15, %s1136_s15   ;;  %s893_s14 = sphi %s937_s14, %s1135_s14   ;;  %s889_s13 = sphi %s935_s13, %s1134_s13   ;;  %s885_s12 = sphi %s933_s12, %s1133_s12  }
   0x8   : > { %p54_p0 = scmp.ne.s32.totalorder %s889_s13, %s885_s12  ;;  %p967_p1 = scmp.eq.s32.totalorder %s567_s18, 0 }
   0x9   : > { %p971_p2 = scmp.eq.s32.totalorder %s567_s18, 1  ;;  %p133_p3 = scmp.eq.s32.totalorder %s568_s19, 1 }
   0xa   : > { %s1121_s20 = scalar_select %p967_p1, 1, 0 }
   0xb   : > { %p977_p4 = por %p967_p1, %p54_p0  ;;  %p569_p5 = scmp.ge.s32.totalorder %s905_s17, 1 }
   0xc   : > { %p982_p6 = por %p133_p3, %p54_p0  ;;  %p140_p7 = scmp.lt.s32.totalorder %s905_s17, 3 }
   0xd   : > { %s1123_s22 = scalar_select %p977_p4, 1, 0 }
   0xe   : > { %s1124_s23 = scalar_select %p982_p6, 1, 0 }
   0xf   : > { %p987_p8 = pnand %p569_p5, %p140_p7  ;;  %s907_s25 = smov [#allocation5]  }
  0x10   : > { %s152_s26 = sshll.u32 %s907_s25, 4  ;;  %s908_s28 = smov [#allocation7]   ;;  %s153_s26 = int_to_ptr.vmem [resolvable:$true] %s152_s26 }
  0x11   : > { %p668_p9 = pneg %p987_p8  ;;  %s168_s29 = sshll.u32 %s908_s28, 4  ;;  %s169_s29 = int_to_ptr.vmem [resolvable:$true] %s168_s29 }
  0x12   : > { %s752_s30 = scalar_lea.vmem %s153_s26, 8192  ;;  %p760_p5 = scmp.lt.s32.totalorder %s153_s26, %s153_s26 }
  0x13   : > { %p996_p11 = pnand %p668_p9, %p967_p1  ;;  %p753_p13 = scmp.ne.s32.totalorder %s153_s26, %s752_s30 }
  0x14   : > { %p761_p7 = scmp.lt.s32.totalorder %s752_s30, %s752_s30 }
  0x15   : > { %p743_p12 = pneg %p996_p11 }
  0x16   : > { %p762_p10 = por %p761_p7, %p760_p5 }
  0x17   : > { %p755_p0 = pnand %p753_p13, %p743_p12 }
  0x19   : > { %p756_p3 = pneg %p755_p0 }
  0x1b   : > { %p763_p9 = pnand %p762_p10, %p756_p3 }
  0x1d   : > { %766 = shalt.err (!%p763_p9)
}
  0x1e   : > { %s909_s4 = smov 128   ;;  %s910_s5 = smov 8  }
  0x1f   : > { %671 = dma.hbm_to_vmem [thread:$0]  (!%p996_p11), %s1115_s1, 8192, %s153_s26, [#allocation6], %s909_s4, %s909_s4, %s910_s5  }
  0x20   : > { %s778_s8 = scalar_lea.vmem %s169_s29, 128  ;;  %p786_p1 = scmp.lt.s32.totalorder %s169_s29, %s169_s29 }
  0x21   : > { %p779_p6 = scmp.ne.s32.totalorder %s169_s29, %s778_s8  ;;  %p787_p4 = scmp.lt.s32.totalorder %s778_s8, %s778_s8 }
  0x23   : > { %p781_p13 = pnand %p779_p6, %p743_p12  ;;  %p788_p5 = por %p787_p4, %p786_p1 }
  0x25   : > { %p782_p0 = pneg %p781_p13 }
  0x27   : > { %p789_p10 = pnand %p788_p5, %p782_p0 }
  0x29   : > { %792 = shalt.err (!%p789_p10)
}
  0x2a   : > { %674 = dma.hbm_to_vmem [thread:$0]  (!%p996_p11), %s1116_s2, 128, %s169_s29, [#allocation6]  }
  0x2b   : > { %s29_s11 = sadd.s32 1, %s901_s16  ;;  %s41_s18 = sadd.s32 1, %s893_s14 }
  0x2c   : > { %p30_p1 = scmp.ge.s32.totalorder %s29_s11, 2  ;;  %p48_p4 = scmp.ne.s32.totalorder %s893_s14, %s889_s13 }
  0x2d   : > { %p49_p6 = scmp.eq.s32.totalorder %s905_s17, 0  ;;  %p685_p12 = scmp.lt.s32.totalorder %s905_s17, 2 }
  0x2e   : > { %s1139_s11 = smov (%p30_p1, %s29_s11), 0  ;;  %p1028_p7 = por %p971_p2, %p48_p4 }
  0x2f   : > { %p50_p3 = por %p49_p6, %p48_p4  ;;  %s36_s25 = ssub.s32 %s901_s16, %s1139_s11 }
  0x30   : > { %s179_s26 = sand.u32 1, %s893_s14   ;;  %p39_p9 = scmp.eq.s32.totalorder %s36_s25, 0 }
  0x31   : > { %s573_s27 = sshll.u32 %s179_s26, 5  ;;  %s585_s28 = sshll.u32 %s901_s16, 9 }
  0x32   : > { %s1037_s29 = scalar_select %p39_p9, %s893_s14, %s41_s18  }
  0x33   : > { %s191_s5 = scalar_lea.hbm %s1114_s0, %s585_s28  ;;  %s183_s6 = scalar_lea.vmem [#allocation2], %s573_s27 }
  0x34   : > { %s193_s7 = sshll.u32 %s183_s6, 4  ;;  %p1044_p11 = pnand %p685_p12, %p50_p3  ;;  %s194_s7 = int_to_ptr.vmem [resolvable:$true] %s193_s7 }
  0x35   : > { %s180_s8 = scalar_lea.sflag [#allocation3], %s179_s26  ;;  %s806_s9 = scalar_lea.vmem %s194_s7, 512 }
  0x36   : > { %p795_p2 = pneg %p1044_p11  ;;  %p807_p13 = scmp.ne.s32.totalorder %s194_s7, %s806_s9 }
  0x37   : > { %s911_s10 = smov [#allocation2]  }
  0x38   : > { %p809_p0 = pnand %p807_p13, %p795_p2  ;;  %s811_s18 = sshll.u32 %s911_s10, 4  ;;  %s812_s18 = int_to_ptr.vmem [resolvable:$false] %s811_s18 }
  0x39   : > { %s813_s25 = scalar_lea.vmem %s812_s18, 1024  ;;  %p814_p10 = scmp.lt.s32.totalorder %s194_s7, %s812_s18 }
  0x3a   : > { %p810_p5 = pneg %p809_p0  ;;  %p815_p1 = scmp.lt.s32.totalorder %s813_s25, %s806_s9 }
  0x3c   : > { %p816_p4 = por %p815_p1, %p814_p10 }
  0x3e   : > { %p817_p6 = pnand %p816_p4, %p810_p5 }
  0x40   : > { %820 = shalt.err (!%p817_p6)
}
  0x41   : > { %678 = dma.hbm_to_vmem [thread:$0]  (!%p1044_p11), %s191_s5, 512, %s194_s7, %s180_s8  }
  0x42   : > { %202 = sbr.rel (%p987_p8) target bundleno = 324 (0x144), region = 32  ;;  %s1055_s26 = sand.u32 (!%p987_p8), 1, %s889_s13  }
  0x43   : > { %s577_s27 = sshll.u32 (!%p987_p8), %s1055_s26, 5  ;;  %s205_s28 = scalar_lea.sflag (!%p987_p8), [#allocation3], %s1055_s26 }
  0x44   : > { %s1059_s30 = scalar_lea.vmem (!%p987_p8), [#allocation2], %s577_s27  ;;  %p1129_p12 = scmp.ne.s32.totalorder (!%p987_p8), %s1123_s22, 0 }
  0x47   : > { %872 = dma.done.wait (%p1129_p12), %s205_s28, 512  }
  0x48   : > { %874 = vsyncadd (%p1129_p12), %s205_s28, 4294966784  ;;  %p1130_p3 = scmp.ne.s32.totalorder %s1121_s20, 0 }
  0x4a   : > { %876 = dma.done.wait (%p1130_p3), [#allocation6], 8320  }
  0x4b   : > { %878 = vsyncadd (%p1130_p3), [#allocation6], 4294958976  ;;  %v274_v0 = vld [vmem:[#allocation5 + $0xf8] sm:$0xff]  ;;  %v273_v4 = vld [vmem:[#allocation5 + $0xf0] sm:$0xff]  ;;  %s580_s20 = sshll.u32 %s1055_s26, 3  ;;  %s582_s22 = sshll.u32 %s897_s15, 7 }
  0x4c   : > { %v306_v1 = vld [vmem:[#allocation5 + $0x1f8] sm:$0xff]  ;;  %586 = vmatprep.subr.mxu0 %v274_v0  ;;  %v305_v5 = vld [vmem:[#allocation5 + $0x1f0] sm:$0xff]  ;;  %v272_v8 = vld [vmem:[#allocation5 + $0xe8] sm:$0xff]  ;;  %s238_s24 = scalar_lea.vmem [#allocation8], %s580_s20  ;;  %s462_s7 = scalar_lea.hbm %s1117_s3, %s582_s22 }
  0x4d   : > { %v258_v2 = vld [vmem:[#allocation5 + $0x78] sm:$0xff]  ;;  %621 = vmatprep.subr.mxu1 %v306_v1  ;;  %v257_v6 = vld [vmem:[#allocation5 + $0x70] sm:$0xff]  ;;  %v304_v9 = vld [vmem:[#allocation5 + $0x1e8] sm:$0xff]  ;;  %s464_s4 = sshll.u32 %s238_s24, 4  ;;  %s450_s21 = scalar_lea.sflag [#allocation4], %s1055_s26  ;;  %s465_s4 = int_to_ptr.vmem [resolvable:$true] %s464_s4 }
  0x4e   : > { %v290_v3 = vld [vmem:[#allocation5 + $0x178] sm:$0xff]  ;;  %587 = vmatpush3.msra.mxu0 %v258_v2  ;;  %v289_v7 = vld [vmem:[#allocation5 + $0x170] sm:$0xff]  ;;  %v256_v10 = vld [vmem:[#allocation5 + $0x68] sm:$0xff]  ;;  %s821_s8 = scalar_lea.vmem %s465_s4, 128  ;;  %s912_s9 = smov [#allocation8]  }
  0x4f   : > { %622 = vmatpush3.msra.mxu1 %v290_v3  ;;  %588 = vmatprep.subr.mxu0 %v273_v4  ;;  %v288_v11 = vld [vmem:[#allocation5 + $0x168] sm:$0xff]  ;;  %v271_v12 = vld [vmem:[#allocation5 + $0xe0] sm:$0xff]  ;;  %v270_v16 = vld [vmem:[#allocation5 + $0xd8] sm:$0xff]  ;;  %p822_p8 = scmp.ne.s32.totalorder %s465_s4, %s821_s8  ;;  %s825_s10 = sshll.u32 %s912_s9, 4  ;;  %s826_s10 = int_to_ptr.vmem [resolvable:$false] %s825_s10 }
  0x50   : > { %623 = vmatprep.subr.mxu1 %v305_v5  ;;  %589 = vmatpush3.msra.mxu0 %v257_v6  ;;  %v303_v13 = vld [vmem:[#allocation5 + $0x1e0] sm:$0xff]  ;;  %v302_v17 = vld [vmem:[#allocation5 + $0x1d8] sm:$0xff]  ;;  %v269_v20 = vld [vmem:[#allocation5 + $0xd0] sm:$0xff]  ;;  %s827_s15 = scalar_lea.vmem %s826_s10, 256  ;;  %p828_p2 = scmp.lt.s32.totalorder %s465_s4, %s826_s10 }
  0x51   : > { %624 = vmatpush3.msra.mxu1 %v289_v7  ;;  %590 = vmatprep.subr.mxu0 %v272_v8  ;;  %v255_v14 = vld [vmem:[#allocation5 + $0x60] sm:$0xff]  ;;  %v254_v18 = vld [vmem:[#allocation5 + $0x58] sm:$0xff]  ;;  %v301_v21 = vld [vmem:[#allocation5 + $0x1d0] sm:$0xff]  ;;  %p823_p9 = pnand %p822_p8, %p1028_p7  ;;  %p829_p13 = scmp.lt.s32.totalorder %s827_s15, %s821_s8 }
  0x52   : > { %625 = vmatprep.subr.mxu1 %v304_v9  ;;  %v287_v15 = vld [vmem:[#allocation5 + $0x160] sm:$0xff]  ;;  %591 = vmatpush3.msra.mxu0 %v256_v10  ;;  %v286_v19 = vld [vmem:[#allocation5 + $0x158] sm:$0xff]  ;;  %v253_v22 = vld [vmem:[#allocation5 + $0x50] sm:$0xff] }
  0x53   : > { %626 = vmatpush3.msra.mxu1 %v288_v11  ;;  %592 = vmatprep.subr.mxu0 %v271_v12  ;;  %v285_v23 = vld [vmem:[#allocation5 + $0x150] sm:$0xff]  ;;  %v268_v24 = vld [vmem:[#allocation5 + $0xc8] sm:$0xff]  ;;  %v267_v28 = vld [vmem:[#allocation5 + $0xc0] sm:$0xff]  ;;  %p824_p11 = pneg %p823_p9  ;;  %p830_p0 = por %p829_p13, %p828_p2 }
  0x54   : > { %627 = vmatprep.subr.mxu1 %v303_v13  ;;  %593 = vmatpush3.msra.mxu0 %v255_v14  ;;  %v300_v25 = vld [vmem:[#allocation5 + $0x1c8] sm:$0xff]  ;;  %v299_v29 = vld [vmem:[#allocation5 + $0x1c0] sm:$0xff]  ;;  %v266_v32 = vld [vmem:[#allocation5 + $0xb8] sm:$0xff] }
  0x55   : > { %628 = vmatpush3.msra.mxu1 %v287_v15  ;;  %594 = vmatprep.subr.mxu0 %v270_v16  ;;  %v252_v26 = vld [vmem:[#allocation5 + $0x48] sm:$0xff]  ;;  %v251_v30 = vld [vmem:[#allocation5 + $0x40] sm:$0xff]  ;;  %v298_v33 = vld [vmem:[#allocation5 + $0x1b8] sm:$0xff]  ;;  %p831_p5 = pnand %p830_p0, %p824_p11 }
  0x56   : > { %629 = vmatprep.subr.mxu1 %v302_v17  ;;  %595 = vmatpush3.msra.mxu0 %v254_v18  ;;  %v284_v27 = vld [vmem:[#allocation5 + $0x148] sm:$0xff]  ;;  %v283_v31 = vld [vmem:[#allocation5 + $0x140] sm:$0xff]  ;;  %v250_v34 = vld [vmem:[#allocation5 + $0x38] sm:$0xff] }
  0x57   : > { %630 = vmatpush3.msra.mxu1 %v286_v19  ;;  %596 = vmatprep.subr.mxu0 %v269_v20  ;;  %v282_v35 = vld [vmem:[#allocation5 + $0x138] sm:$0xff]  ;;  %v265_v36 = vld [vmem:[#allocation5 + $0xb0] sm:$0xff]  ;;  %v264_v40 = vld [vmem:[#allocation5 + $0xa8] sm:$0xff] }
  0x58   : > { %631 = vmatprep.subr.mxu1 %v301_v21  ;;  %597 = vmatpush3.msra.mxu0 %v253_v22  ;;  %v297_v37 = vld [vmem:[#allocation5 + $0x1b0] sm:$0xff]  ;;  %v296_v41 = vld [vmem:[#allocation5 + $0x1a8] sm:$0xff]  ;;  %v263_v44 = vld [vmem:[#allocation5 + $0xa0] sm:$0xff] }
  0x59   : > { %632 = vmatpush3.msra.mxu1 %v285_v23  ;;  %598 = vmatprep.subr.mxu0 %v268_v24  ;;  %v249_v38 = vld [vmem:[#allocation5 + $0x30] sm:$0xff]  ;;  %v248_v42 = vld [vmem:[#allocation5 + $0x28] sm:$0xff]  ;;  %v295_v45 = vld [vmem:[#allocation5 + $0x1a0] sm:$0xff] }
  0x5a   : > { %633 = vmatprep.subr.mxu1 %v300_v25  ;;  %599 = vmatpush3.msra.mxu0 %v252_v26  ;;  %v281_v39 = vld [vmem:[#allocation5 + $0x130] sm:$0xff]  ;;  %v280_v43 = vld [vmem:[#allocation5 + $0x128] sm:$0xff]  ;;  %v247_v46 = vld [vmem:[#allocation5 + $0x20] sm:$0xff] }
  0x5b   : > { %634 = vmatpush3.msra.mxu1 %v284_v27  ;;  %600 = vmatprep.subr.mxu0 %v267_v28  ;;  %v279_v47 = vld [vmem:[#allocation5 + $0x120] sm:$0xff]  ;;  %v262_v48 = vld [vmem:[#allocation5 + $0x98] sm:$0xff]  ;;  %v261_v52 = vld [vmem:[#allocation5 + $0x90] sm:$0xff] }
  0x5c   : > { %635 = vmatprep.subr.mxu1 %v299_v29  ;;  %601 = vmatpush3.msra.mxu0 %v251_v30  ;;  %v294_v49 = vld [vmem:[#allocation5 + $0x198] sm:$0xff]  ;;  %v293_v53 = vld [vmem:[#allocation5 + $0x190] sm:$0xff]  ;;  %v260_v56 = vld [vmem:[#allocation5 + $0x88] sm:$0xff] }
  0x5d   : > { %636 = vmatpush3.msra.mxu1 %v283_v31  ;;  %602 = vmatprep.subr.mxu0 %v266_v32  ;;  %v246_v50 = vld [vmem:[#allocation5 + $0x18] sm:$0xff]  ;;  %v245_v54 = vld [vmem:[#allocation5 + $0x10] sm:$0xff]  ;;  %v292_v57 = vld [vmem:[#allocation5 + $0x188] sm:$0xff] }
  0x5e   : > { %637 = vmatprep.subr.mxu1 %v298_v33  ;;  %603 = vmatpush3.msra.mxu0 %v250_v34  ;;  %v278_v51 = vld [vmem:[#allocation5 + $0x118] sm:$0xff]  ;;  %v277_v55 = vld [vmem:[#allocation5 + $0x110] sm:$0xff]  ;;  %v244_v58 = vld [vmem:[#allocation5 + $0x8] sm:$0xff] }
  0x5f   : > { %638 = vmatpush3.msra.mxu1 %v282_v35  ;;  %604 = vmatprep.subr.mxu0 %v265_v36  ;;  %v276_v59 = vld [vmem:[#allocation5 + $0x108] sm:$0xff]  ;;  %v259_v60 = vld [vmem:[#allocation5 + $0x80] sm:$0xff]  ;;  %v242_v1 = vld [vmem:[%s1059_s30 + $0x18] sm:$0xff] }
  0x60   : > { %639 = vmatprep.subr.mxu1 %v297_v37  ;;  %605 = vmatpush3.msra.mxu0 %v249_v38  ;;  %v291_v61 = vld [vmem:[#allocation5 + $0x180] sm:$0xff]  ;;  %v240_v63 = vld [vmem:[%s1059_s30 + $0x8] sm:$0xff]  ;;  %v241_v3 = vld [vmem:[%s1059_s30 + $0x10] sm:$0xff] }
  0x61   : > { %640 = vmatpush3.msra.mxu1 %v281_v39  ;;  %606 = vmatprep.subr.mxu0 %v264_v40  ;;  %v243_v62 = vld [vmem:[#allocation5] sm:$0xff] }
  0x62   : > { %641 = vmatprep.subr.mxu1 %v296_v41  ;;  %607 = vmatpush3.msra.mxu0 %v248_v42  ;;  %v275_v0 = vld [vmem:[#allocation5 + $0x100] sm:$0xff] }
  0x63   : > { %642 = vmatpush3.msra.mxu1 %v280_v43  ;;  %608 = vmatprep.subr.mxu0 %v263_v44  ;;  %v239_v2 = vld [vmem:[%s1059_s30] sm:$0xff] }
  0x64   : > { %643 = vmatprep.subr.mxu1 %v295_v45  ;;  %609 = vmatpush3.msra.mxu0 %v247_v46  ;;  %v307_v6 = vld [vmem:[#allocation7] sm:$0xff] }
  0x65   : > { %644 = vmatpush3.msra.mxu1 %v279_v47  ;;  %610 = vmatprep.subr.mxu0 %v262_v48 }
  0x66   : > { %645 = vmatprep.subr.mxu1 %v294_v49  ;;  %611 = vmatpush3.msra.mxu0 %v246_v50 }
  0x67   : > { %646 = vmatpush3.msra.mxu1 %v278_v51  ;;  %612 = vmatprep.subr.mxu0 %v261_v52 }
  0x68   : > { %647 = vmatprep.subr.mxu1 %v293_v53  ;;  %613 = vmatpush3.msra.mxu0 %v245_v54 }
  0x69   : > { %648 = vmatpush3.msra.mxu1 %v277_v55  ;;  %614 = vmatprep.subr.mxu0 %v260_v56 }
  0x6a   : > { %649 = vmatprep.subr.mxu1 %v292_v57  ;;  %615 = vmatpush3.msra.mxu0 %v244_v58 }
  0x6b   : > { %650 = vmatpush3.msra.mxu1 %v276_v59  ;;  %616 = vmatprep.subr.mxu0 %v259_v60 }
  0x6c   : > { %651 = vmatprep.subr.mxu1 %v291_v61  ;;  %617 = vmatpush3.msra.mxu0 %v243_v62 }
  0x6d   : > { %372 = vmatprep.mubr.f32.mxu0 %v240_v63  ;;  %652 = vmatpush3.msra.mxu1 %v275_v0 }
  0x6e   : > { %442 = vmatprep.mubr.f32.mxu1 %v242_v1  ;;  %373 = vmatmul.mubr.f32.vlgmr.msra.gmra.mxu0 %v239_v2 }
  0x6f   : > { %443 = vmatmul.mubr.f32.vlgmr.msra.gmra.mxu1 %v241_v3 }
 0x12e   : > { %v618_v4 = vpop.f32.mrf.mxu0 }
 0x12f   : > { %v653_v5 = vpop.f32.mrf.mxu1 }
 0x130   : > { %v619_v7 = vpop.f32.mrf.mxu0 }
 0x131   : > { %v654_v8 = vpop.f32.mrf.mxu1  ;;  %v620_v9 = vadd.f32 %v619_v7, %v618_v4 }
 0x132   : > { %v655_v11 = vadd.f32 %v654_v8, %v653_v5 }
 0x133   : > { %v375_v10 = vadd.f32 %v620_v9, %v307_v6 }
 0x135   : > { %v445_v12 = vadd.f32 %v655_v11, %v375_v10 }
 0x137   : > { %448 = vst [vmem:[%s238_s24] sm:$0xff] %v445_v12 }
 0x138   : > { %834 = shalt.err (!%p831_p5)
}
 0x139   : > { %s835_s18 = scalar_lea.hbm %s462_s7, 128  ;;  %s839_s27 = scalar_lea.hbm %s1117_s3, 256 }
 0x13a   : > { %p836_p10 = scmp.ne.s32.totalorder %s462_s7, %s835_s18  ;;  %p840_p6 = scmp.lt.s32.totalorder %s462_s7, %s1117_s3 }
 0x13b   : > { %p841_p12 = scmp.lt.s32.totalorder %s839_s27, %s835_s18 }
 0x13c   : > { %p837_p1 = pnand %p836_p10, %p1028_p7 }
 0x13d   : > { %p842_p3 = por %p841_p12, %p840_p6 }
 0x13e   : > { %p838_p4 = pneg %p837_p1 }
 0x140   : > { %p843_p8 = pnand %p842_p3, %p838_p4 }
 0x142   : > { %846 = shalt.err (!%p843_p8)
}
 0x143   : > { %666 = dma.vmem_to_hbm [thread:$0]  (%p1028_p7), %s465_s4, 128, %s462_s7, %s450_s21  }
 0x144 PF: > { %s476_s20 = sand.u32 1, %s885_s12   ;;  %p1131_p9 = scmp.ne.s32.totalorder %s1124_s23, 0 }
 0x145   : > { %p1132_p11 = scmp.ge.s32.totalorder %s905_s17, 2  ;;  %s477_s22 = scalar_lea.sflag [#allocation4], %s476_s20 }
 0x147   : > { %p680_p2 = pnand %p1132_p11, %p1131_p9 }
 0x149   : > { %p681_p13 = pneg %p680_p2 }
 0x14b   : > { %880 = dma.done.wait (%p681_p13), %s477_s22, 128  }
 0x14c   : > { %882 = vsyncadd (%p681_p13), %s477_s22, 4294967168  ;;  %s20_s17 = sadd.s32 1, %s905_s17   ;;  %s1133_s12 = smov %s889_s13 }
 0x14d   : > { %p17_p0 = scmp.ge.s32.totalorder %s20_s17, 4   ;;  %s1134_s13 = smov %s893_s14 }
 0x14e   : > { %s1135_s14 = smov %s1037_s29  ;;  %s1136_s15 = smov %s901_s16 }
 0x14f   : > { %s1137_s16 = smov %s1139_s11  ;;  %19 = sbr.rel (!%p17_p0) target bundleno = 7 (0x7), region = 86 }
 0x154   :  { %482 = vsyncpa [#allocation3], 1 }
 0x155   :  { %484 = vsyncpa [#allocation3 + $0x1], 1 }
 0x156   :  { %485 = vsyncpa [#allocation6], 1 }
 0x157   :  { %486 = vsyncpa [#allocation4], 1 }
 0x158   :  { %488 = vsyncpa [#allocation4 + $0x1], 1 }

// kernel: tpu_custom_call.1
= control target key start
LH: loop header
LB: loop body
LE: loop exit
PB: predicated region body
PF: predicated region fallthrough
CT: control target
= control target key end

     0   :  { %8 = vsyncpa [#allocation3], 0  ;;  %s1114_s0 = inlined_call_operand.hbm [shape: f32[2,8,512], index: 0, kind: input, shape index: {}]   ;;  %s1115_s1 = inlined_call_operand.hbm [shape: f32[512,128], index: 1, kind: input, shape index: {}]   ;;  %s1116_s2 = inlined_call_operand.hbm [shape: f32[8,128], index: 2, kind: input, shape index: {}]   ;;  %s1117_s3 = inlined_call_operand.hbm [shape: f32[2,8,128], index: 3, kind: output, shape index: {}]  }
   0x1   :  { %10 = vsyncpa [#allocation3 + $0x1], 0 }
   0x2   :  { %11 = vsyncpa [#allocation6], 0 }
   0x3   :  { %12 = vsyncpa [#allocation4], 0 }
   0x4   :  { %14 = vsyncpa [#allocation4 + $0x1], 0  ;;  %s933_s12 = smov 0   ;;  %s935_s13 = smov 0  }
   0x5   :  { %s937_s14 = smov 0   ;;  %s939_s15 = smov 0  }
   0x6   :  { %s941_s16 = smov 0   ;;  %s943_s17 = smov 0  }
   0x7 LB: > { %s567_s18 = sadd.s32 4294967295, %s905_s17   ;;  %s568_s19 = sadd.s32 4294967294, %s905_s17   ;;  %s905_s17 = sphi %s943_s17, %s20_s17   ;;  %s901_s16 = sphi %s941_s16, %s1137_s16   ;;  %s897_s15 = sphi %s939_s15, %s1136_s15   ;;  %s893_s14 = sphi %s937_s14, %s1135_s14   ;;  %s889_s13 = sphi %s935_s13, %s1134_s13   ;;  %s885_s12 = sphi %s933_s12, %s1133_s12  }
   0x8   : > { %p54_p0 = scmp.ne.s32.totalorder %s889_s13, %s885_s12  ;;  %p967_p1 = scmp.eq.s32.totalorder %s567_s18, 0 }
   0x9   : > { %p971_p2 = scmp.eq.s32.totalorder %s567_s18, 1  ;;  %p133_p3 = scmp.eq.s32.totalorder %s568_s19, 1 }
   0xa   : > { %s1121_s20 = scalar_select %p967_p1, 1, 0 }
   0xb   : > { %p977_p4 = por %p967_p1, %p54_p0  ;;  %p569_p5 = scmp.ge.s32.totalorder %s905_s17, 1 }
   0xc   : > { %p982_p6 = por %p133_p3, %p54_p0  ;;  %p140_p7 = scmp.lt.s32.totalorder %s905_s17, 3 }
   0xd   : > { %s1123_s22 = scalar_select %p977_p4, 1, 0 }
   0xe   : > { %s1124_s23 = scalar_select %p982_p6, 1, 0 }
   0xf   : > { %p987_p8 = pnand %p569_p5, %p140_p7  ;;  %s907_s25 = smov [#allocation5]  }
  0x10   : > { %s152_s26 = sshll.u32 %s907_s25, 4  ;;  %s908_s28 = smov [#allocation7]   ;;  %s153_s26 = int_to_ptr.vmem [resolvable:$true] %s152_s26 }
  0x11   : > { %p668_p9 = pneg %p987_p8  ;;  %s168_s29 = sshll.u32 %s908_s28, 4  ;;  %s169_s29 = int_to_ptr.vmem [resolvable:$true] %s168_s29 }
  0x12   : > { %s752_s30 = scalar_lea.vmem %s153_s26, 8192  ;;  %p760_p5 = scmp.lt.s32.totalorder %s153_s26, %s153_s26 }
  0x13   : > { %p996_p11 = pnand %p668_p9, %p967_p1  ;;  %p753_p13 = scmp.ne.s32.totalorder %s153_s26, %s752_s30 }
  0x14   : > { %p761_p7 = scmp.lt.s32.totalorder %s752_s30, %s752_s30 }
  0x15   : > { %p743_p12 = pneg %p996_p11 }
  0x16   : > { %p762_p10 = por %p761_p7, %p760_p5 }
  0x17   : > { %p755_p0 = pnand %p753_p13, %p743_p12 }
  0x19   : > { %p756_p3 = pneg %p755_p0 }
  0x1b   : > { %p763_p9 = pnand %p762_p10, %p756_p3 }
  0x1d   : > { %766 = shalt.err (!%p763_p9)
}
  0x1e   : > { %s909_s4 = smov 128   ;;  %s910_s5 = smov 8  }
  0x1f   : > { %671 = dma.hbm_to_vmem [thread:$0]  (!%p996_p11), %s1115_s1, 8192, %s153_s26, [#allocation6], %s909_s4, %s909_s4, %s910_s5  }
  0x20   : > { %s778_s8 = scalar_lea.vmem %s169_s29, 128  ;;  %p786_p1 = scmp.lt.s32.totalorder %s169_s29, %s169_s29 }
  0x21   : > { %p779_p6 = scmp.ne.s32.totalorder %s169_s29, %s778_s8  ;;  %p787_p4 = scmp.lt.s32.totalorder %s778_s8, %s778_s8 }
  0x23   : > { %p781_p13 = pnand %p779_p6, %p743_p12  ;;  %p788_p5 = por %p787_p4, %p786_p1 }
  0x25   : > { %p782_p0 = pneg %p781_p13 }
  0x27   : > { %p789_p10 = pnand %p788_p5, %p782_p0 }
  0x29   : > { %792 = shalt.err (!%p789_p10)
}
  0x2a   : > { %674 = dma.hbm_to_vmem [thread:$0]  (!%p996_p11), %s1116_s2, 128, %s169_s29, [#allocation6]  }
  0x2b   : > { %s29_s11 = sadd.s32 1, %s901_s16  ;;  %s41_s18 = sadd.s32 1, %s893_s14 }
  0x2c   : > { %p30_p1 = scmp.ge.s32.totalorder %s29_s11, 2  ;;  %p48_p4 = scmp.ne.s32.totalorder %s893_s14, %s889_s13 }
  0x2d   : > { %p49_p6 = scmp.eq.s32.totalorder %s905_s17, 0  ;;  %p685_p12 = scmp.lt.s32.totalorder %s905_s17, 2 }
  0x2e   : > { %s1139_s11 = smov (%p30_p1, %s29_s11), 0  ;;  %p1028_p7 = por %p971_p2, %p48_p4 }
  0x2f   : > { %p50_p3 = por %p49_p6, %p48_p4  ;;  %s36_s25 = ssub.s32 %s901_s16, %s1139_s11 }
  0x30   : > { %s179_s26 = sand.u32 1, %s893_s14   ;;  %p39_p9 = scmp.eq.s32.totalorder %s36_s25, 0 }
  0x31   : > { %s573_s27 = sshll.u32 %s179_s26, 5  ;;  %s585_s28 = sshll.u32 %s901_s16, 9 }
  0x32   : > { %s1037_s29 = scalar_select %p39_p9, %s893_s14, %s41_s18  }
  0x33   : > { %s191_s5 = scalar_lea.hbm %s1114_s0, %s585_s28  ;;  %s183_s6 = scalar_lea.vmem [#allocation2], %s573_s27 }
  0x34   : > { %s193_s7 = sshll.u32 %s183_s6, 4  ;;  %p1044_p11 = pnand %p685_p12, %p50_p3  ;;  %s194_s7 = int_to_ptr.vmem [resolvable:$true] %s193_s7 }
  0x35   : > { %s180_s8 = scalar_lea.sflag [#allocation3], %s179_s26  ;;  %s806_s9 = scalar_lea.vmem %s194_s7, 512 }
  0x36   : > { %p795_p2 = pneg %p1044_p11  ;;  %p807_p13 = scmp.ne.s32.totalorder %s194_s7, %s806_s9 }
  0x37   : > { %s911_s10 = smov [#allocation2]  }
  0x38   : > { %p809_p0 = pnand %p807_p13, %p795_p2  ;;  %s811_s18 = sshll.u32 %s911_s10, 4  ;;  %s812_s18 = int_to_ptr.vmem [resolvable:$false] %s811_s18 }
  0x39   : > { %s813_s25 = scalar_lea.vmem %s812_s18, 1024  ;;  %p814_p10 = scmp.lt.s32.totalorder %s194_s7, %s812_s18 }
  0x3a   : > { %p810_p5 = pneg %p809_p0  ;;  %p815_p1 = scmp.lt.s32.totalorder %s813_s25, %s806_s9 }
  0x3c   : > { %p816_p4 = por %p815_p1, %p814_p10 }
  0x3e   : > { %p817_p6 = pnand %p816_p4, %p810_p5 }
  0x40   : > { %820 = shalt.err (!%p817_p6)
}
  0x41   : > { %678 = dma.hbm_to_vmem [thread:$0]  (!%p1044_p11), %s191_s5, 512, %s194_s7, %s180_s8  }
  0x42   : > { %202 = sbr.rel (%p987_p8) target bundleno = 324 (0x144), region = 32  ;;  %s1055_s26 = sand.u32 (!%p987_p8), 1, %s889_s13  }
  0x43   : > { %s577_s27 = sshll.u32 (!%p987_p8), %s1055_s26, 5  ;;  %s205_s28 = scalar_lea.sflag (!%p987_p8), [#allocation3], %s1055_s26 }
  0x44   : > { %s1059_s30 = scalar_lea.vmem (!%p987_p8), [#allocation2], %s577_s27  ;;  %p1129_p12 = scmp.ne.s32.totalorder (!%p987_p8), %s1123_s22, 0 }
  0x47   : > { %872 = dma.done.wait (%p1129_p12), %s205_s28, 512  }
  0x48   : > { %874 = vsyncadd (%p1129_p12), %s205_s28, 4294966784  ;;  %p1130_p3 = scmp.ne.s32.totalorder %s1121_s20, 0 }
  0x4a   : > { %876 = dma.done.wait (%p1130_p3), [#allocation6], 8320  }
  0x4b   : > { %878 = vsyncadd (%p1130_p3), [#allocation6], 4294958976  ;;  %v274_v0 = vld [vmem:[#allocation5 + $0xf8] sm:$0xff]  ;;  %v273_v4 = vld [vmem:[#allocation5 + $0xf0] sm:$0xff]  ;;  %s580_s20 = sshll.u32 %s1055_s26, 3  ;;  %s582_s22 = sshll.u32 %s897_s15, 7 }
  0x4c   : > { %v306_v1 = vld [vmem:[#allocation5 + $0x1f8] sm:$0xff]  ;;  %586 = vmatprep.subr.mxu0 %v274_v0  ;;  %v305_v5 = vld [vmem:[#allocation5 + $0x1f0] sm:$0xff]  ;;  %v272_v8 = vld [vmem:[#allocation5 + $0xe8] sm:$0xff]  ;;  %s238_s24 = scalar_lea.vmem [#allocation8], %s580_s20  ;;  %s462_s7 = scalar_lea.hbm %s1117_s3, %s582_s22 }
  0x4d   : > { %v258_v2 = vld [vmem:[#allocation5 + $0x78] sm:$0xff]  ;;  %621 = vmatprep.subr.mxu1 %v306_v1  ;;  %v257_v6 = vld [vmem:[#allocation5 + $0x70] sm:$0xff]  ;;  %v304_v9 = vld [vmem:[#allocation5 + $0x1e8] sm:$0xff]  ;;  %s464_s4 = sshll.u32 %s238_s24, 4  ;;  %s450_s21 = scalar_lea.sflag [#allocation4], %s1055_s26  ;;  %s465_s4 = int_to_ptr.vmem [resolvable:$true] %s464_s4 }
  0x4e   : > { %v290_v3 = vld [vmem:[#allocation5 + $0x178] sm:$0xff]  ;;  %587 = vmatpush3.msra.mxu0 %v258_v2  ;;  %v289_v7 = vld [vmem:[#allocation5 + $0x170] sm:$0xff]  ;;  %v256_v10 = vld [vmem:[#allocation5 + $0x68] sm:$0xff]  ;;  %s821_s8 = scalar_lea.vmem %s465_s4, 128  ;;  %s912_s9 = smov [#allocation8]  }
  0x4f   : > { %622 = vmatpush3.msra.mxu1 %v290_v3  ;;  %588 = vmatprep.subr.mxu0 %v273_v4  ;;  %v288_v11 = vld [vmem:[#allocation5 + $0x168] sm:$0xff]  ;;  %v271_v12 = vld [vmem:[#allocation5 + $0xe0] sm:$0xff]  ;;  %v270_v16 = vld [vmem:[#allocation5 + $0xd8] sm:$0xff]  ;;  %p822_p8 = scmp.ne.s32.totalorder %s465_s4, %s821_s8  ;;  %s825_s10 = sshll.u32 %s912_s9, 4  ;;  %s826_s10 = int_to_ptr.vmem [resolvable:$false] %s825_s10 }
  0x50   : > { %623 = vmatprep.subr.mxu1 %v305_v5  ;;  %589 = vmatpush3.msra.mxu0 %v257_v6  ;;  %v303_v13 = vld [vmem:[#allocation5 + $0x1e0] sm:$0xff]  ;;  %v302_v17 = vld [vmem:[#allocation5 + $0x1d8] sm:$0xff]  ;;  %v269_v20 = vld [vmem:[#allocation5 + $0xd0] sm:$0xff]  ;;  %s827_s15 = scalar_lea.vmem %s826_s10, 256  ;;  %p828_p2 = scmp.lt.s32.totalorder %s465_s4, %s826_s10 }
  0x51   : > { %624 = vmatpush3.msra.mxu1 %v289_v7  ;;  %590 = vmatprep.subr.mxu0 %v272_v8  ;;  %v255_v14 = vld [vmem:[#allocation5 + $0x60] sm:$0xff]  ;;  %v254_v18 = vld [vmem:[#allocation5 + $0x58] sm:$0xff]  ;;  %v301_v21 = vld [vmem:[#allocation5 + $0x1d0] sm:$0xff]  ;;  %p823_p9 = pnand %p822_p8, %p1028_p7  ;;  %p829_p13 = scmp.lt.s32.totalorder %s827_s15, %s821_s8 }
  0x52   : > { %625 = vmatprep.subr.mxu1 %v304_v9  ;;  %v287_v15 = vld [vmem:[#allocation5 + $0x160] sm:$0xff]  ;;  %591 = vmatpush3.msra.mxu0 %v256_v10  ;;  %v286_v19 = vld [vmem:[#allocation5 + $0x158] sm:$0xff]  ;;  %v253_v22 = vld [vmem:[#allocation5 + $0x50] sm:$0xff] }
  0x53   : > { %626 = vmatpush3.msra.mxu1 %v288_v11  ;;  %592 = vmatprep.subr.mxu0 %v271_v12  ;;  %v285_v23 = vld [vmem:[#allocation5 + $0x150] sm:$0xff]  ;;  %v268_v24 = vld [vmem:[#allocation5 + $0xc8] sm:$0xff]  ;;  %v267_v28 = vld [vmem:[#allocation5 + $0xc0] sm:$0xff]  ;;  %p824_p11 = pneg %p823_p9  ;;  %p830_p0 = por %p829_p13, %p828_p2 }
  0x54   : > { %627 = vmatprep.subr.mxu1 %v303_v13  ;;  %593 = vmatpush3.msra.mxu0 %v255_v14  ;;  %v300_v25 = vld [vmem:[#allocation5 + $0x1c8] sm:$0xff]  ;;  %v299_v29 = vld [vmem:[#allocation5 + $0x1c0] sm:$0xff]  ;;  %v266_v32 = vld [vmem:[#allocation5 + $0xb8] sm:$0xff] }
  0x55   : > { %628 = vmatpush3.msra.mxu1 %v287_v15  ;;  %594 = vmatprep.subr.mxu0 %v270_v16  ;;  %v252_v26 = vld [vmem:[#allocation5 + $0x48] sm:$0xff]  ;;  %v251_v30 = vld [vmem:[#allocation5 + $0x40] sm:$0xff]  ;;  %v298_v33 = vld [vmem:[#allocation5 + $0x1b8] sm:$0xff]  ;;  %p831_p5 = pnand %p830_p0, %p824_p11 }
  0x56   : > { %629 = vmatprep.subr.mxu1 %v302_v17  ;;  %595 = vmatpush3.msra.mxu0 %v254_v18  ;;  %v284_v27 = vld [vmem:[#allocation5 + $0x148] sm:$0xff]  ;;  %v283_v31 = vld [vmem:[#allocation5 + $0x140] sm:$0xff]  ;;  %v250_v34 = vld [vmem:[#allocation5 + $0x38] sm:$0xff] }
  0x57   : > { %630 = vmatpush3.msra.mxu1 %v286_v19  ;;  %596 = vmatprep.subr.mxu0 %v269_v20  ;;  %v282_v35 = vld [vmem:[#allocation5 + $0x138] sm:$0xff]  ;;  %v265_v36 = vld [vmem:[#allocation5 + $0xb0] sm:$0xff]  ;;  %v264_v40 = vld [vmem:[#allocation5 + $0xa8] sm:$0xff] }
  0x58   : > { %631 = vmatprep.subr.mxu1 %v301_v21  ;;  %597 = vmatpush3.msra.mxu0 %v253_v22  ;;  %v297_v37 = vld [vmem:[#allocation5 + $0x1b0] sm:$0xff]  ;;  %v296_v41 = vld [vmem:[#allocation5 + $0x1a8] sm:$0xff]  ;;  %v263_v44 = vld [vmem:[#allocation5 + $0xa0] sm:$0xff] }
  0x59   : > { %632 = vmatpush3.msra.mxu1 %v285_v23  ;;  %598 = vmatprep.subr.mxu0 %v268_v24  ;;  %v249_v38 = vld [vmem:[#allocation5 + $0x30] sm:$0xff]  ;;  %v248_v42 = vld [vmem:[#allocation5 + $0x28] sm:$0xff]  ;;  %v295_v45 = vld [vmem:[#allocation5 + $0x1a0] sm:$0xff] }
  0x5a   : > { %633 = vmatprep.subr.mxu1 %v300_v25  ;;  %599 = vmatpush3.msra.mxu0 %v252_v26  ;;  %v281_v39 = vld [vmem:[#allocation5 + $0x130] sm:$0xff]  ;;  %v280_v43 = vld [vmem:[#allocation5 + $0x128] sm:$0xff]  ;;  %v247_v46 = vld [vmem:[#allocation5 + $0x20] sm:$0xff] }
  0x5b   : > { %634 = vmatpush3.msra.mxu1 %v284_v27  ;;  %600 = vmatprep.subr.mxu0 %v267_v28  ;;  %v279_v47 = vld [vmem:[#allocation5 + $0x120] sm:$0xff]  ;;  %v262_v48 = vld [vmem:[#allocation5 + $0x98] sm:$0xff]  ;;  %v261_v52 = vld [vmem:[#allocation5 + $0x90] sm:$0xff] }
  0x5c   : > { %635 = vmatprep.subr.mxu1 %v299_v29  ;;  %601 = vmatpush3.msra.mxu0 %v251_v30  ;;  %v294_v49 = vld [vmem:[#allocation5 + $0x198] sm:$0xff]  ;;  %v293_v53 = vld [vmem:[#allocation5 + $0x190] sm:$0xff]  ;;  %v260_v56 = vld [vmem:[#allocation5 + $0x88] sm:$0xff] }
  0x5d   : > { %636 = vmatpush3.msra.mxu1 %v283_v31  ;;  %602 = vmatprep.subr.mxu0 %v266_v32  ;;  %v246_v50 = vld [vmem:[#allocation5 + $0x18] sm:$0xff]  ;;  %v245_v54 = vld [vmem:[#allocation5 + $0x10] sm:$0xff]  ;;  %v292_v57 = vld [vmem:[#allocation5 + $0x188] sm:$0xff] }
  0x5e   : > { %637 = vmatprep.subr.mxu1 %v298_v33  ;;  %603 = vmatpush3.msra.mxu0 %v250_v34  ;;  %v278_v51 = vld [vmem:[#allocation5 + $0x118] sm:$0xff]  ;;  %v277_v55 = vld [vmem:[#allocation5 + $0x110] sm:$0xff]  ;;  %v244_v58 = vld [vmem:[#allocation5 + $0x8] sm:$0xff] }
  0x5f   : > { %638 = vmatpush3.msra.mxu1 %v282_v35  ;;  %604 = vmatprep.subr.mxu0 %v265_v36  ;;  %v276_v59 = vld [vmem:[#allocation5 + $0x108] sm:$0xff]  ;;  %v259_v60 = vld [vmem:[#allocation5 + $0x80] sm:$0xff]  ;;  %v242_v1 = vld [vmem:[%s1059_s30 + $0x18] sm:$0xff] }
  0x60   : > { %639 = vmatprep.subr.mxu1 %v297_v37  ;;  %605 = vmatpush3.msra.mxu0 %v249_v38  ;;  %v291_v61 = vld [vmem:[#allocation5 + $0x180] sm:$0xff]  ;;  %v240_v63 = vld [vmem:[%s1059_s30 + $0x8] sm:$0xff]  ;;  %v241_v3 = vld [vmem:[%s1059_s30 + $0x10] sm:$0xff] }
  0x61   : > { %640 = vmatpush3.msra.mxu1 %v281_v39  ;;  %606 = vmatprep.subr.mxu0 %v264_v40  ;;  %v243_v62 = vld [vmem:[#allocation5] sm:$0xff] }
  0x62   : > { %641 = vmatprep.subr.mxu1 %v296_v41  ;;  %607 = vmatpush3.msra.mxu0 %v248_v42  ;;  %v275_v0 = vld [vmem:[#allocation5 + $0x100] sm:$0xff] }
  0x63   : > { %642 = vmatpush3.msra.mxu1 %v280_v43  ;;  %608 = vmatprep.subr.mxu0 %v263_v44  ;;  %v239_v2 = vld [vmem:[%s1059_s30] sm:$0xff] }
  0x64   : > { %643 = vmatprep.subr.mxu1 %v295_v45  ;;  %609 = vmatpush3.msra.mxu0 %v247_v46  ;;  %v307_v6 = vld [vmem:[#allocation7] sm:$0xff] }
  0x65   : > { %644 = vmatpush3.msra.mxu1 %v279_v47  ;;  %610 = vmatprep.subr.mxu0 %v262_v48 }
  0x66   : > { %645 = vmatprep.subr.mxu1 %v294_v49  ;;  %611 = vmatpush3.msra.mxu0 %v246_v50 }
  0x67   : > { %646 = vmatpush3.msra.mxu1 %v278_v51  ;;  %612 = vmatprep.subr.mxu0 %v261_v52 }
  0x68   : > { %647 = vmatprep.subr.mxu1 %v293_v53  ;;  %613 = vmatpush3.msra.mxu0 %v245_v54 }
  0x69   : > { %648 = vmatpush3.msra.mxu1 %v277_v55  ;;  %614 = vmatprep.subr.mxu0 %v260_v56 }
  0x6a   : > { %649 = vmatprep.subr.mxu1 %v292_v57  ;;  %615 = vmatpush3.msra.mxu0 %v244_v58 }
  0x6b   : > { %650 = vmatpush3.msra.mxu1 %v276_v59  ;;  %616 = vmatprep.subr.mxu0 %v259_v60 }
  0x6c   : > { %651 = vmatprep.subr.mxu1 %v291_v61  ;;  %617 = vmatpush3.msra.mxu0 %v243_v62 }
  0x6d   : > { %372 = vmatprep.mubr.f32.mxu0 %v240_v63  ;;  %652 = vmatpush3.msra.mxu1 %v275_v0 }
  0x6e   : > { %442 = vmatprep.mubr.f32.mxu1 %v242_v1  ;;  %373 = vmatmul.mubr.f32.vlgmr.msra.gmra.mxu0 %v239_v2 }
  0x6f   : > { %443 = vmatmul.mubr.f32.vlgmr.msra.gmra.mxu1 %v241_v3 }
 0x12e   : > { %v618_v4 = vpop.f32.mrf.mxu0 }
 0x12f   : > { %v653_v5 = vpop.f32.mrf.mxu1 }
 0x130   : > { %v619_v7 = vpop.f32.mrf.mxu0 }
 0x131   : > { %v654_v8 = vpop.f32.mrf.mxu1  ;;  %v620_v9 = vadd.f32 %v619_v7, %v618_v4 }
 0x132   : > { %v655_v11 = vadd.f32 %v654_v8, %v653_v5 }
 0x133   : > { %v375_v10 = vadd.f32 %v620_v9, %v307_v6 }
 0x135   : > { %v445_v12 = vadd.f32 %v655_v11, %v375_v10 }
 0x137   : > { %448 = vst [vmem:[%s238_s24] sm:$0xff] %v445_v12 }
 0x138   : > { %834 = shalt.err (!%p831_p5)
}
 0x139   : > { %s835_s18 = scalar_lea.hbm %s462_s7, 128  ;;  %s839_s27 = scalar_lea.hbm %s1117_s3, 256 }
 0x13a   : > { %p836_p10 = scmp.ne.s32.totalorder %s462_s7, %s835_s18  ;;  %p840_p6 = scmp.lt.s32.totalorder %s462_s7, %s1117_s3 }
 0x13b   : > { %p841_p12 = scmp.lt.s32.totalorder %s839_s27, %s835_s18 }
 0x13c   : > { %p837_p1 = pnand %p836_p10, %p1028_p7 }
 0x13d   : > { %p842_p3 = por %p841_p12, %p840_p6 }
 0x13e   : > { %p838_p4 = pneg %p837_p1 }
 0x140   : > { %p843_p8 = pnand %p842_p3, %p838_p4 }
 0x142   : > { %846 = shalt.err (!%p843_p8)
}
 0x143   : > { %666 = dma.vmem_to_hbm [thread:$0]  (%p1028_p7), %s465_s4, 128, %s462_s7, %s450_s21  }
 0x144 PF: > { %s476_s20 = sand.u32 1, %s885_s12   ;;  %p1131_p9 = scmp.ne.s32.totalorder %s1124_s23, 0 }
 0x145   : > { %p1132_p11 = scmp.ge.s32.totalorder %s905_s17, 2  ;;  %s477_s22 = scalar_lea.sflag [#allocation4], %s476_s20 }
 0x147   : > { %p680_p2 = pnand %p1132_p11, %p1131_p9 }
 0x149   : > { %p681_p13 = pneg %p680_p2 }
 0x14b   : > { %880 = dma.done.wait (%p681_p13), %s477_s22, 128  }
 0x14c   : > { %882 = vsyncadd (%p681_p13), %s477_s22, 4294967168  ;;  %s20_s17 = sadd.s32 1, %s905_s17   ;;  %s1133_s12 = smov %s889_s13 }
 0x14d   : > { %p17_p0 = scmp.ge.s32.totalorder %s20_s17, 4   ;;  %s1134_s13 = smov %s893_s14 }
 0x14e   : > { %s1135_s14 = smov %s1037_s29  ;;  %s1136_s15 = smov %s901_s16 }
 0x14f   : > { %s1137_s16 = smov %s1139_s11  ;;  %19 = sbr.rel (!%p17_p0) target bundleno = 7 (0x7), region = 86 }
 0x154   :  { %482 = vsyncpa [#allocation3], 1 }
 0x155   :  { %484 = vsyncpa [#allocation3 + $0x1], 1 }
 0x156   :  { %485 = vsyncpa [#allocation6], 1 }
 0x157   :  { %486 = vsyncpa [#allocation4], 1 }
 0x158   :  { %488 = vsyncpa [#allocation4 + $0x1], 1 }

</bundles_post_ra>
